<compile_context>
chip_gen: v7x
topology: tpu7x:2x2x1
jax: 0.10.0
libtpu: 0.0.40
codegen_flags: <defaults>
</compile_context>

<pallas_src>
import functools
import math

import jax
import jax.numpy as jnp
from jax import lax
from jax.experimental import pallas as pl
from jax.experimental.pallas import tpu as pltpu


def _wkv7_chunk_kernel(r_ref, w_ref, k_ref, v_ref, a_ref, b_ref, s0_ref,
                       x_ref, s_out_ref, s_scr, *, hb, chunk):
    """One (head-group, time-chunk) grid step of the chunked RWKV-7 recurrence.

    All stream refs are (HB, C, D) head-major tiles; state refs are (HB, D, D).
    """
    f32 = jnp.float32
    C = chunk
    c_idx = pl.program_id(1)

    # Initialize the f32 state accumulator for this head group at its first chunk.
    @pl.when(c_idx == 0)
    def _():
        s_scr[...] = s0_ref[...].astype(f32)

    # (C, C) iota compares, hoisted out of the per-head loop.
    row = lax.broadcasted_iota(jnp.int32, (C, C), 0)
    col = lax.broadcasted_iota(jnp.int32, (C, C), 1)
    incl = col <= row                       # j <= i
    strict = col < row                      # j <  i
    incl_f = incl.astype(f32)               # MXU operand for the in-chunk cumsum
    eye = (col == row).astype(f32)

    dn_nt = (((1,), (1,)), ((), ()))        # (C,Dk)x(M,Dk) -> (C,M): contract feature dim
    dn_tn = (((0,), (0,)), ((), ()))        # (C,M)x(C,N)   -> (M,N): contract time dim
    zero = jnp.float32(0.0)

    n_doubles = max(int(math.log2(C)) - 1, 0)

    def head_body(h, carry):
        r = r_ref[h].astype(f32)            # (C, Dk)
        w = w_ref[h].astype(f32)
        k = k_ref[h].astype(f32)
        v = v_ref[h].astype(f32)            # (C, Dv)
        a = a_ref[h].astype(f32)
        b = b_ref[h].astype(f32)
        S0 = s_scr[h]                       # (Dv, Dk) f32

        # Cumulative in-chunk log-decay via an MXU matmul (no cumsum primitive).
        lw = jnp.log(w)                                            # w = exp(-exp(.)) > 0
        cum = jnp.dot(incl_f, lw, preferred_element_type=f32)      # cum[t] = sum_{s<=t} lw[s]
        g_in = jnp.exp(cum)                                        # g_t
        g_ex = g_in / w                                            # g_{t-1}
        g_iv = 1.0 / g_in                                          # 1 / g_t

        a_h = g_ex * a                                             # A~
        c_h = g_iv * b                                             # C~
        k_h = g_iv * k                                             # K~
        r_h = g_in * r                                             # R~

        L = jnp.where(strict,
                      lax.dot_general(a_h, c_h, dn_nt, preferred_element_type=f32), zero)
        Lak = jnp.where(strict,
                        lax.dot_general(a_h, k_h, dn_nt, preferred_element_type=f32), zero)
        Mcr = jnp.where(incl,
                        lax.dot_general(r_h, c_h, dn_nt, preferred_element_type=f32), zero)
        Mkr = jnp.where(incl,
                        lax.dot_general(r_h, k_h, dn_nt, preferred_element_type=f32), zero)

        # (I - L)^{-1} = (I+L)(I+L^2)(I+L^4)...  (L strictly lower => nilpotent)
        inv = eye + L
        Lp = L
        for _ in range(n_doubles):
            Lp = jnp.dot(Lp, Lp, preferred_element_type=f32)
            inv = inv + jnp.dot(inv, Lp, preferred_element_type=f32)

        Z = jnp.dot(inv, a_h, preferred_element_type=f32)                       # (C, Dk)
        U = jnp.dot(inv, jnp.dot(Lak, v, preferred_element_type=f32),
                    preferred_element_type=f32)                                 # (C, Dv)

        W2 = lax.dot_general(Z, S0, dn_nt, preferred_element_type=f32) + U      # Z S0^T + U
        X = (lax.dot_general(r_h, S0, dn_nt, preferred_element_type=f32)
             + jnp.dot(Mcr, W2, preferred_element_type=f32)
             + jnp.dot(Mkr, v, preferred_element_type=f32))                     # (C, Dv)

        g_last = g_in[C - 1:C, :]                                               # (1, Dk)
        S_new = (S0
                 + lax.dot_general(v, k_h, dn_tn, preferred_element_type=f32)
                 + lax.dot_general(W2, c_h, dn_tn, preferred_element_type=f32)) * g_last

        s_scr[h] = S_new
        x_ref[h] = X.astype(x_ref.dtype)
        return carry

    lax.fori_loop(0, hb, head_body, 0)

    @pl.when(c_idx == pl.num_programs(1) - 1)
    def _():
        s_out_ref[...] = s_scr[...].astype(s_out_ref.dtype)


def _default_chunk_size():
    try:
        kind = jax.devices()[0].device_kind.lower()
    except Exception:
        return 64
    if ("v5" in kind) or ("v4" in kind) or ("v3" in kind) or ("v2" in kind):
        return 64                      # keep the O(C^3) inverse cheap on older MXUs
    return 128                         # v6e / v7x


def _pick_head_block(H):
    # Largest head block in {32, 16, 8} dividing H while keeping >= 2 head
    # groups (so the "parallel" grid axis can shard across v7x TensorCores).
    for hb in (32, 16, 8):
        if H % hb == 0 and H // hb >= 2:
            return hb
    return H


def wkv7(seq_length, r, w, k, v, a, b, state2, *, num_heads, head_size,
         chunk_size=None):
    """Inputs r,w,k,v,a,b: any shape with T*H*D elements (e.g. (T, H*D)).
    state2: (H, D, D).  Returns (x: (T, H, 1, D), state2_out: (H, D, D))."""
    T, H, D = int(seq_length), num_heads, head_size
    x_dtype = v.dtype
    if chunk_size is None:
        chunk_size = _default_chunk_size()

    # Head-major layout: one transpose per stream in the wrapper, dense (C, D)
    # per-head slabs (and dense x stores) inside the kernel.
    def to_htd(u):
        return jnp.transpose(u.reshape(T, H, D), (1, 0, 2))     # (H, T, D)

    r3, w3, k3, v3, a3, b3 = map(to_htd, (r, w, k, v, a, b))

    # Chunk length: power of two (Neumann-doubling inverse), <= requested size,
    # >= 8 whenever the padded sequence spans more than one chunk (block rule).
    c_req = max(1, int(chunk_size))
    C = 1 << (c_req.bit_length() - 1)
    c_max = 1 << max(T - 1, 0).bit_length()      # next power of two >= T
    C = min(C, c_max)
    if C < 8:
        C = min(8, c_max)
    pad = (-T) % C
    if pad:
        cfg = ((0, 0), (0, pad), (0, 0))
        r3 = jnp.pad(r3, cfg)
        k3 = jnp.pad(k3, cfg)                    # k = 0 -> padded steps leave S untouched
        v3 = jnp.pad(v3, cfg)
        a3 = jnp.pad(a3, cfg)                    # a = 0
        b3 = jnp.pad(b3, cfg)                    # b = 0
        w3 = jnp.pad(w3, cfg, constant_values=1.0)   # identity decay
    Tp = T + pad
    n_chunks = Tp // C

    HB = _pick_head_block(H)
    G = H // HB

    kern = functools.partial(_wkv7_chunk_kernel, hb=HB, chunk=C)

    stream_spec = pl.BlockSpec((HB, C, D), lambda g, c: (g, c, 0))
    state_spec = pl.BlockSpec((HB, D, D), lambda g, c: (g, 0, 0))

    x_hm, s_out = pl.pallas_call(
        kern,
        out_shape=(jax.ShapeDtypeStruct((H, Tp, D), x_dtype),
                   jax.ShapeDtypeStruct((H, D, D), state2.dtype)),
        grid_spec=pltpu.PrefetchScalarGridSpec(
            num_scalar_prefetch=0,
            grid=(G, n_chunks),
            in_specs=[stream_spec] * 6 + [state_spec],
            out_specs=(stream_spec, state_spec),
            scratch_shapes=[pltpu.VMEM((HB, D, D), jnp.float32)],
        ),
        input_output_aliases={6: 1},            # state2 -> state2_out (in place)
        compiler_params=pltpu.CompilerParams(
            dimension_semantics=("parallel", "arbitrary"),
            vmem_limit_bytes=64 * 1024 * 1024),
    )(r3, w3, k3, v3, a3, b3, state2)

    x = jnp.transpose(x_hm[:, :T, :], (1, 0, 2)).reshape(T, H, 1, D)
    return x, s_out


def wkv7_ref(seq_length, r, w, k, v, a, b, state2, *, num_heads, head_size):
    """Pure-JAX sequential reference mirroring the PyTorch loop."""
    T, H, D = seq_length, num_heads, head_size
    r, w, k, v, a, b = (u.reshape(T, H, D) for u in (r, w, k, v, a, b))

    def step(S, inp):
        r_t, w_t, k_t, v_t, a_t, b_t = inp               # each (H, D)
        sa = jnp.einsum('hij,hj->hi', S, a_t)
        S_new = (S * w_t[:, None, :]
                 + sa[:, :, None] * b_t[:, None, :]
                 + v_t[:, :, None] * k_t[:, None, :])
        x_t = jnp.einsum('hij,hj->hi', S_new, r_t)
        return S_new, x_t

    S_final, xs = lax.scan(step, state2, (r, w, k, v, a, b))
    return xs.reshape(T, H, 1, D), S_final


def _run_case(key, T, H, D, chunk_size):
    ks = jax.random.split(key, 7)
    r = jax.random.normal(ks[0], (T, H * D), jnp.float32) * 0.5
    w = jnp.exp(-jnp.exp(jax.random.normal(ks[1], (T, H * D), jnp.float32) * 0.3 - 1.5))
    k = jax.random.normal(ks[2], (T, H * D), jnp.float32) * 0.5
    v = jax.random.normal(ks[3], (T, H * D), jnp.float32) * 0.5
    a = jax.random.normal(ks[4], (T, H * D), jnp.float32) * 0.5
    b = jax.random.normal(ks[5], (T, H * D), jnp.float32) * 0.5
    state2 = jax.random.normal(ks[6], (H, D, D), jnp.float32) * 0.1

    x, s_out = wkv7(T, r, w, k, v, a, b, state2,
                    num_heads=H, head_size=D, chunk_size=chunk_size)
    x = jax.block_until_ready(x)
    s_out = jax.block_until_ready(s_out)

    x_ref, s_ref = wkv7_ref(T, r, w, k, v, a, b, state2,
                            num_heads=H, head_size=D)
    assert x.shape == (T, H, 1, D) and s_out.shape == (H, D, D)
    assert jnp.allclose(x, x_ref, atol=2e-3, rtol=2e-3), \
        float(jnp.max(jnp.abs(x - x_ref)))
    assert jnp.allclose(s_out, s_ref, atol=2e-3, rtol=2e-3), \
        float(jnp.max(jnp.abs(s_out - s_ref)))


if __name__ == "__main__":
    key = jax.random.PRNGKey(0)
    k1, k2 = jax.random.split(key, 2)

    # Case 1: two chunks (exercises the cross-chunk state carry), single head group.
    _run_case(k1, T=16, H=2, D=32, chunk_size=8)

    # Case 2: multiple head groups (HB=8, G=2) and four time chunks.
    _run_case(k2, T=32, H=16, D=16, chunk_size=8)

    print("KERNEL_OK")
</pallas_src>

<mosaic_0001>
module attributes {stable_mosaic.version = 11 : i64} {
  func.func @_wkv7_chunk_kernel(%arg0: i32, %arg1: i32, %arg2: memref<2x8x32xf32, #tpu.memory_space<vmem>>, %arg3: memref<2x8x32xf32, #tpu.memory_space<vmem>>, %arg4: memref<2x8x32xf32, #tpu.memory_space<vmem>>, %arg5: memref<2x8x32xf32, #tpu.memory_space<vmem>>, %arg6: memref<2x8x32xf32, #tpu.memory_space<vmem>>, %arg7: memref<2x8x32xf32, #tpu.memory_space<vmem>>, %arg8: memref<2x32x32xf32, #tpu.memory_space<vmem>>, %arg9: memref<2x8x32xf32, #tpu.memory_space<vmem>>, %arg10: memref<2x32x32xf32, #tpu.memory_space<vmem>>, %arg11: memref<2x32x32xf32, #tpu.memory_space<vmem>>) attributes {dimension_semantics = [#tpu.dimension_semantics<parallel>, #tpu.dimension_semantics<arbitrary>], iteration_bounds = array<i64: 1, 2>, scalar_prefetch = 0 : i64, scratch_operands = 1 : i64, tpu.core_type = #tpu.core_type<tc>, window_params = [{transform_indices = @transform_0, window_bounds = array<i64: 2, 8, 32>}, {transform_indices = @transform_1, window_bounds = array<i64: 2, 8, 32>}, {transform_indices = @transform_2, window_bounds = array<i64: 2, 8, 32>}, {transform_indices = @transform_3, window_bounds = array<i64: 2, 8, 32>}, {transform_indices = @transform_4, window_bounds = array<i64: 2, 8, 32>}, {transform_indices = @transform_5, window_bounds = array<i64: 2, 8, 32>}, {transform_indices = @transform_6, window_bounds = array<i64: 2, 32, 32>}, {transform_indices = @transform_7, window_bounds = array<i64: 2, 8, 32>}, {transform_indices = @transform_8, window_bounds = array<i64: 2, 32, 32>}]} {
    %c0_i32 = arith.constant 0 : i32
    %0 = arith.cmpi eq, %arg1, %c0_i32 : i32
    %1 = arith.extui %0 : i1 to i32
    %c0_i32_0 = arith.constant 0 : i32
    %2 = arith.cmpi ne, %1, %c0_i32_0 : i32
    scf.if %2 {
      %c0 = arith.constant 0 : index
      %c0_5 = arith.constant 0 : index
      %c0_6 = arith.constant 0 : index
      %16 = vector.load %arg8[%c0, %c0_5, %c0_6] : memref<2x32x32xf32, #tpu.memory_space<vmem>>, vector<2x32x32xf32>
      %c0_7 = arith.constant 0 : index
      %c0_8 = arith.constant 0 : index
      %c0_9 = arith.constant 0 : index
      %17 = vector.load %arg11[%c0_7, %c0_8, %c0_9] : memref<2x32x32xf32, #tpu.memory_space<vmem>>, vector<2x32x32xf32>
      tpu.vector_store %arg11[%c0_7, %c0_8, %c0_9], %16 {strides = array<i32>} : memref<2x32x32xf32, #tpu.memory_space<vmem>>, vector<2x32x32xf32>,
    } else {
    }
    %3 = tpu.iota {dimensions = array<i32: 0>} : vector<8x8xi32>
    %4 = tpu.iota {dimensions = array<i32: 1>} : vector<8x8xi32>
    %5 = arith.cmpi sle, %4, %3 : vector<8x8xi32>
    %6 = arith.cmpi slt, %4, %3 : vector<8x8xi32>
    %7 = arith.extui %5 : vector<8x8xi1> to vector<8x8xi32>
    %8 = arith.sitofp %7 : vector<8x8xi32> to vector<8x8xf32>
    %9 = arith.cmpi eq, %4, %3 : vector<8x8xi32>
    %10 = arith.extui %9 : vector<8x8xi1> to vector<8x8xi32>
    %11 = arith.sitofp %10 : vector<8x8xi32> to vector<8x8xf32>
    %cst = arith.constant 0.000000e+00 : f32
    %c0_i32_1 = arith.constant 0 : i32
    %c2_i32 = arith.constant 2 : i32
    %12 = arith.addi %c0_i32_1, %c2_i32 : i32
    %c1_i32 = arith.constant 1 : i32
    scf.for %arg12 = %c0_i32_1 to %12 step %c1_i32  : i32 {
      %16 = arith.index_cast %arg12 : i32 to index
      %c0 = arith.constant 0 : index
      %c0_5 = arith.constant 0 : index
      %17 = vector.load %arg2[%16, %c0, %c0_5] : memref<2x8x32xf32, #tpu.memory_space<vmem>>, vector<1x8x32xf32>
      %18 = vector.shape_cast %17 : vector<1x8x32xf32> to vector<8x32xf32>
      %19 = arith.index_cast %arg12 : i32 to index
      %c0_6 = arith.constant 0 : index
      %c0_7 = arith.constant 0 : index
      %20 = vector.load %arg3[%19, %c0_6, %c0_7] : memref<2x8x32xf32, #tpu.memory_space<vmem>>, vector<1x8x32xf32>
      %21 = vector.shape_cast %20 : vector<1x8x32xf32> to vector<8x32xf32>
      %22 = arith.index_cast %arg12 : i32 to index
      %c0_8 = arith.constant 0 : index
      %c0_9 = arith.constant 0 : index
      %23 = vector.load %arg4[%22, %c0_8, %c0_9] : memref<2x8x32xf32, #tpu.memory_space<vmem>>, vector<1x8x32xf32>
      %24 = vector.shape_cast %23 : vector<1x8x32xf32> to vector<8x32xf32>
      %25 = arith.index_cast %arg12 : i32 to index
      %c0_10 = arith.constant 0 : index
      %c0_11 = arith.constant 0 : index
      %26 = vector.load %arg5[%25, %c0_10, %c0_11] : memref<2x8x32xf32, #tpu.memory_space<vmem>>, vector<1x8x32xf32>
      %27 = vector.shape_cast %26 : vector<1x8x32xf32> to vector<8x32xf32>
      %28 = arith.index_cast %arg12 : i32 to index
      %c0_12 = arith.constant 0 : index
      %c0_13 = arith.constant 0 : index
      %29 = vector.load %arg6[%28, %c0_12, %c0_13] : memref<2x8x32xf32, #tpu.memory_space<vmem>>, vector<1x8x32xf32>
      %30 = vector.shape_cast %29 : vector<1x8x32xf32> to vector<8x32xf32>
      %31 = arith.index_cast %arg12 : i32 to index
      %c0_14 = arith.constant 0 : index
      %c0_15 = arith.constant 0 : index
      %32 = vector.load %arg7[%31, %c0_14, %c0_15] : memref<2x8x32xf32, #tpu.memory_space<vmem>>, vector<1x8x32xf32>
      %33 = vector.shape_cast %32 : vector<1x8x32xf32> to vector<8x32xf32>
      %34 = arith.index_cast %arg12 : i32 to index
      %c0_16 = arith.constant 0 : index
      %c0_17 = arith.constant 0 : index
      %35 = vector.load %arg11[%34, %c0_16, %c0_17] : memref<2x32x32xf32, #tpu.memory_space<vmem>>, vector<1x32x32xf32>
      %36 = vector.shape_cast %35 : vector<1x32x32xf32> to vector<32x32xf32>
      %37 = math.log %21 : vector<8x32xf32>
      %cst_18 = arith.constant dense<0.000000e+00> : vector<8x32xf32>
      %38 = tpu.matmul %8, %37, %cst_18 {dimension_numbers = #tpu.dot_dimension_numbers<[1], [0], [0], [1], [0, 0, 1, 1], [], []>} : vector<8x8xf32>, vector<8x32xf32>, vector<8x32xf32> -> vector<8x32xf32>
      %39 = math.exp %38 : vector<8x32xf32>
      %40 = arith.divf %39, %21 : vector<8x32xf32>
      %cst_19 = arith.constant 1.000000e+00 : f32
      %41 = vector.broadcast %cst_19 : f32 to vector<8x32xf32>
      %42 = arith.divf %41, %39 : vector<8x32xf32>
      %43 = arith.mulf %40, %30 : vector<8x32xf32>
      %44 = arith.mulf %42, %33 : vector<8x32xf32>
      %45 = arith.mulf %42, %24 : vector<8x32xf32>
      %46 = arith.mulf %39, %18 : vector<8x32xf32>
      %cst_20 = arith.constant dense<0.000000e+00> : vector<8x8xf32>
      %47 = tpu.matmul %43, %44, %cst_20 {dimension_numbers = #tpu.dot_dimension_numbers<[1], [1], [0], [0], [0, 0, 1, 0], [], []>} : vector<8x32xf32>, vector<8x32xf32>, vector<8x8xf32> -> vector<8x8xf32>
      %48 = vector.broadcast %cst : f32 to vector<8x8xf32>
      %49 = arith.select %6, %47, %48 : vector<8x8xi1>, vector<8x8xf32>
      %cst_21 = arith.constant dense<0.000000e+00> : vector<8x8xf32>
      %50 = tpu.matmul %43, %45, %cst_21 {dimension_numbers = #tpu.dot_dimension_numbers<[1], [1], [0], [0], [0, 0, 1, 0], [], []>} : vector<8x32xf32>, vector<8x32xf32>, vector<8x8xf32> -> vector<8x8xf32>
      %51 = vector.broadcast %cst : f32 to vector<8x8xf32>
      %52 = arith.select %6, %50, %51 : vector<8x8xi1>, vector<8x8xf32>
      %cst_22 = arith.constant dense<0.000000e+00> : vector<8x8xf32>
      %53 = tpu.matmul %46, %44, %cst_22 {dimension_numbers = #tpu.dot_dimension_numbers<[1], [1], [0], [0], [0, 0, 1, 0], [], []>} : vector<8x32xf32>, vector<8x32xf32>, vector<8x8xf32> -> vector<8x8xf32>
      %54 = vector.broadcast %cst : f32 to vector<8x8xf32>
      %55 = arith.select %5, %53, %54 : vector<8x8xi1>, vector<8x8xf32>
      %cst_23 = arith.constant dense<0.000000e+00> : vector<8x8xf32>
      %56 = tpu.matmul %46, %45, %cst_23 {dimension_numbers = #tpu.dot_dimension_numbers<[1], [1], [0], [0], [0, 0, 1, 0], [], []>} : vector<8x32xf32>, vector<8x32xf32>, vector<8x8xf32> -> vector<8x8xf32>
      %57 = vector.broadcast %cst : f32 to vector<8x8xf32>
      %58 = arith.select %5, %56, %57 : vector<8x8xi1>, vector<8x8xf32>
      %59 = arith.addf %11, %49 : vector<8x8xf32>
      %cst_24 = arith.constant dense<0.000000e+00> : vector<8x8xf32>
      %60 = tpu.matmul %49, %49, %cst_24 {dimension_numbers = #tpu.dot_dimension_numbers<[1], [0], [0], [1], [0, 0, 1, 1], [], []>} : vector<8x8xf32>, vector<8x8xf32>, vector<8x8xf32> -> vector<8x8xf32>
      %cst_25 = arith.constant dense<0.000000e+00> : vector<8x8xf32>
      %61 = tpu.matmul %59, %60, %cst_25 {dimension_numbers = #tpu.dot_dimension_numbers<[1], [0], [0], [1], [0, 0, 1, 1], [], []>} : vector<8x8xf32>, vector<8x8xf32>, vector<8x8xf32> -> vector<8x8xf32>
      %62 = arith.addf %59, %61 : vector<8x8xf32>
      %cst_26 = arith.constant dense<0.000000e+00> : vector<8x8xf32>
      %63 = tpu.matmul %60, %60, %cst_26 {dimension_numbers = #tpu.dot_dimension_numbers<[1], [0], [0], [1], [0, 0, 1, 1], [], []>} : vector<8x8xf32>, vector<8x8xf32>, vector<8x8xf32> -> vector<8x8xf32>
      %cst_27 = arith.constant dense<0.000000e+00> : vector<8x8xf32>
      %64 = tpu.matmul %62, %63, %cst_27 {dimension_numbers = #tpu.dot_dimension_numbers<[1], [0], [0], [1], [0, 0, 1, 1], [], []>} : vector<8x8xf32>, vector<8x8xf32>, vector<8x8xf32> -> vector<8x8xf32>
      %65 = arith.addf %62, %64 : vector<8x8xf32>
      %cst_28 = arith.constant dense<0.000000e+00> : vector<8x32xf32>
      %66 = tpu.matmul %65, %43, %cst_28 {dimension_numbers = #tpu.dot_dimension_numbers<[1], [0], [0], [1], [0, 0, 1, 1], [], []>} : vector<8x8xf32>, vector<8x32xf32>, vector<8x32xf32> -> vector<8x32xf32>
      %cst_29 = arith.constant dense<0.000000e+00> : vector<8x32xf32>
      %67 = tpu.matmul %52, %27, %cst_29 {dimension_numbers = #tpu.dot_dimension_numbers<[1], [0], [0], [1], [0, 0, 1, 1], [], []>} : vector<8x8xf32>, vector<8x32xf32>, vector<8x32xf32> -> vector<8x32xf32>
      %cst_30 = arith.constant dense<0.000000e+00> : vector<8x32xf32>
      %68 = tpu.matmul %65, %67, %cst_30 {dimension_numbers = #tpu.dot_dimension_numbers<[1], [0], [0], [1], [0, 0, 1, 1], [], []>} : vector<8x8xf32>, vector<8x32xf32>, vector<8x32xf32> -> vector<8x32xf32>
      %cst_31 = arith.constant dense<0.000000e+00> : vector<8x32xf32>
      %69 = tpu.matmul %66, %36, %cst_31 {dimension_numbers = #tpu.dot_dimension_numbers<[1], [1], [0], [0], [0, 0, 1, 0], [], []>} : vector<8x32xf32>, vector<32x32xf32>, vector<8x32xf32> -> vector<8x32xf32>
      %70 = arith.addf %69, %68 : vector<8x32xf32>
      %cst_32 = arith.constant dense<0.000000e+00> : vector<8x32xf32>
      %71 = tpu.matmul %46, %36, %cst_32 {dimension_numbers = #tpu.dot_dimension_numbers<[1], [1], [0], [0], [0, 0, 1, 0], [], []>} : vector<8x32xf32>, vector<32x32xf32>, vector<8x32xf32> -> vector<8x32xf32>
      %cst_33 = arith.constant dense<0.000000e+00> : vector<8x32xf32>
      %72 = tpu.matmul %55, %70, %cst_33 {dimension_numbers = #tpu.dot_dimension_numbers<[1], [0], [0], [1], [0, 0, 1, 1], [], []>} : vector<8x8xf32>, vector<8x32xf32>, vector<8x32xf32> -> vector<8x32xf32>
      %73 = arith.addf %71, %72 : vector<8x32xf32>
      %cst_34 = arith.constant dense<0.000000e+00> : vector<8x32xf32>
      %74 = tpu.matmul %58, %27, %cst_34 {dimension_numbers = #tpu.dot_dimension_numbers<[1], [0], [0], [1], [0, 0, 1, 1], [], []>} : vector<8x8xf32>, vector<8x32xf32>, vector<8x32xf32> -> vector<8x32xf32>
      %75 = arith.addf %73, %74 : vector<8x32xf32>
      %76 = vector.extract_strided_slice %39 {offsets = [7, 0], sizes = [1, 32], strides = [1, 1]} : vector<8x32xf32> to vector<1x32xf32>
      %cst_35 = arith.constant dense<0.000000e+00> : vector<32x32xf32>
      %77 = tpu.matmul %27, %45, %cst_35 {dimension_numbers = #tpu.dot_dimension_numbers<[0], [0], [1], [1], [0, 1, 1, 1], [], []>} : vector<8x32xf32>, vector<8x32xf32>, vector<32x32xf32> -> vector<32x32xf32>
      %78 = arith.addf %36, %77 : vector<32x32xf32>
      %cst_36 = arith.constant dense<0.000000e+00> : vector<32x32xf32>
      %79 = tpu.matmul %70, %44, %cst_36 {dimension_numbers = #tpu.dot_dimension_numbers<[0], [0], [1], [1], [0, 1, 1, 1], [], []>} : vector<8x32xf32>, vector<8x32xf32>, vector<32x32xf32> -> vector<32x32xf32>
      %80 = arith.addf %78, %79 : vector<32x32xf32>
      %81 = vector.broadcast %76 : vector<1x32xf32> to vector<32x32xf32>
      %82 = arith.mulf %80, %81 : vector<32x32xf32>
      %83 = arith.index_cast %arg12 : i32 to index
      %c0_37 = arith.constant 0 : index
      %c0_38 = arith.constant 0 : index
      %84 = vector.load %arg11[%83, %c0_37, %c0_38] : memref<2x32x32xf32, #tpu.memory_space<vmem>>, vector<1x32x32xf32>
      %85 = vector.shape_cast %84 : vector<1x32x32xf32> to vector<32x32xf32>
      %86 = vector.shape_cast %82 : vector<32x32xf32> to vector<1x32x32xf32>
      tpu.vector_store %arg11[%83, %c0_37, %c0_38], %86 {strides = array<i32>} : memref<2x32x32xf32, #tpu.memory_space<vmem>>, vector<1x32x32xf32>,
      %87 = arith.index_cast %arg12 : i32 to index
      %c0_39 = arith.constant 0 : index
      %c0_40 = arith.constant 0 : index
      %88 = vector.load %arg9[%87, %c0_39, %c0_40] : memref<2x8x32xf32, #tpu.memory_space<vmem>>, vector<1x8x32xf32>
      %89 = vector.shape_cast %88 : vector<1x8x32xf32> to vector<8x32xf32>
      %90 = vector.shape_cast %75 : vector<8x32xf32> to vector<1x8x32xf32>
      tpu.vector_store %arg9[%87, %c0_39, %c0_40], %90 {strides = array<i32>} : memref<2x8x32xf32, #tpu.memory_space<vmem>>, vector<1x8x32xf32>,
    }
    %c2_i32_2 = arith.constant 2 : i32
    %c1_i32_3 = arith.constant 1 : i32
    %13 = arith.cmpi eq, %arg1, %c1_i32_3 : i32
    %14 = arith.extui %13 : i1 to i32
    %c0_i32_4 = arith.constant 0 : i32
    %15 = arith.cmpi ne, %14, %c0_i32_4 : i32
    scf.if %15 {
      %c0 = arith.constant 0 : index
      %c0_5 = arith.constant 0 : index
      %c0_6 = arith.constant 0 : index
      %16 = vector.load %arg11[%c0, %c0_5, %c0_6] : memref<2x32x32xf32, #tpu.memory_space<vmem>>, vector<2x32x32xf32>
      %c0_7 = arith.constant 0 : index
      %c0_8 = arith.constant 0 : index
      %c0_9 = arith.constant 0 : index
      %17 = vector.load %arg10[%c0_7, %c0_8, %c0_9] : memref<2x32x32xf32, #tpu.memory_space<vmem>>, vector<2x32x32xf32>
      tpu.vector_store %arg10[%c0_7, %c0_8, %c0_9], %16 {strides = array<i32>} : memref<2x32x32xf32, #tpu.memory_space<vmem>>, vector<2x32x32xf32>,
    } else {
    }
    return
  }
  func.func @transform_0(%arg0: i32, %arg1: i32) -> (i32, i32, i32) {
    %c0_i32 = arith.constant 0 : i32
    %c0_i32_0 = arith.constant 0 : i32
    return %arg0, %arg1, %c0_i32 : i32, i32, i32
  }
  func.func @transform_1(%arg0: i32, %arg1: i32) -> (i32, i32, i32) {
    %c0_i32 = arith.constant 0 : i32
    %c0_i32_0 = arith.constant 0 : i32
    return %arg0, %arg1, %c0_i32 : i32, i32, i32
  }
  func.func @transform_2(%arg0: i32, %arg1: i32) -> (i32, i32, i32) {
    %c0_i32 = arith.constant 0 : i32
    %c0_i32_0 = arith.constant 0 : i32
    return %arg0, %arg1, %c0_i32 : i32, i32, i32
  }
  func.func @transform_3(%arg0: i32, %arg1: i32) -> (i32, i32, i32) {
    %c0_i32 = arith.constant 0 : i32
    %c0_i32_0 = arith.constant 0 : i32
    return %arg0, %arg1, %c0_i32 : i32, i32, i32
  }
  func.func @transform_4(%arg0: i32, %arg1: i32) -> (i32, i32, i32) {
    %c0_i32 = arith.constant 0 : i32
    %c0_i32_0 = arith.constant 0 : i32
    return %arg0, %arg1, %c0_i32 : i32, i32, i32
  }
  func.func @transform_5(%arg0: i32, %arg1: i32) -> (i32, i32, i32) {
    %c0_i32 = arith.constant 0 : i32
    %c0_i32_0 = arith.constant 0 : i32
    return %arg0, %arg1, %c0_i32 : i32, i32, i32
  }
  func.func @transform_6(%arg0: i32, %arg1: i32) -> (i32, i32, i32) {
    %c0_i32 = arith.constant 0 : i32
    %c0_i32_0 = arith.constant 0 : i32
    %c0_i32_1 = arith.constant 0 : i32
    return %arg0, %c0_i32, %c0_i32_0 : i32, i32, i32
  }
  func.func @transform_7(%arg0: i32, %arg1: i32) -> (i32, i32, i32) {
    %c0_i32 = arith.constant 0 : i32
    %c0_i32_0 = arith.constant 0 : i32
    return %arg0, %arg1, %c0_i32 : i32, i32, i32
  }
  func.func @transform_8(%arg0: i32, %arg1: i32) -> (i32, i32, i32) {
    %c0_i32 = arith.constant 0 : i32
    %c0_i32_0 = arith.constant 0 : i32
    %c0_i32_1 = arith.constant 0 : i32
    return %arg0, %c0_i32, %c0_i32_0 : i32, i32, i32
  }
}

</mosaic_0001>

<bundles_post_ra>
// kernel: tpu_custom_call.1
= control target key start
LH: loop header
LB: loop body
LE: loop exit
PB: predicated region body
PF: predicated region fallthrough
CT: control target
= control target key end

     0   :  { %s3924_s0 = inlined_call_operand.hbm [shape: f32[2,16,32], index: 0, kind: input, shape index: {}]   ;;  %s3925_s1 = inlined_call_operand.hbm [shape: f32[2,16,32], index: 1, kind: input, shape index: {}]   ;;  %s3926_s2 = inlined_call_operand.hbm [shape: f32[2,16,32], index: 2, kind: input, shape index: {}]   ;;  %s3927_s3 = inlined_call_operand.hbm [shape: f32[2,16,32], index: 3, kind: input, shape index: {}]   ;;  %s3928_s4 = inlined_call_operand.hbm [shape: f32[2,16,32], index: 4, kind: input, shape index: {}]   ;;  %s3929_s5 = inlined_call_operand.hbm [shape: f32[2,16,32], index: 5, kind: input, shape index: {}]   ;;  %s3930_s6 = inlined_call_operand.hbm [shape: f32[2,32,32], index: 6, kind: input, shape index: {}, may-alias: {6,8}]   ;;  %s3931_s7 = inlined_call_operand.hbm [shape: f32[2,16,32], index: 7, kind: output, shape index: {0}]   ;;  %s3932_s8 = inlined_call_operand.hbm [shape: f32[2,32,32], index: 8, kind: output, shape index: {1}, may-alias: {6,8}]  }
   0x1   :  { %3952 = sst [smem:[#allocation31_spill]] %s3925_s1 }
   0x2   :  { %3953 = sst [smem:[#allocation32_spill]] %s3927_s3 }
   0x3   :  { %3954 = sst [smem:[#allocation33_spill]] %s3930_s6 }
   0x4   :  { %3955 = sst [smem:[#allocation34_spill]] %s3932_s8 }
   0x5   :  { %14 = vsyncpa [#allocation4], 0 }
   0x6   :  { %16 = vsyncpa [#allocation4 + $0x1], 0 }
   0x7   :  { %17 = vsyncpa [#allocation7], 0 }
   0x8   :  { %19 = vsyncpa [#allocation7 + $0x1], 0 }
   0x9   :  { %20 = vsyncpa [#allocation10], 0 }
   0xa   :  { %22 = vsyncpa [#allocation10 + $0x1], 0 }
   0xb   :  { %23 = vsyncpa [#allocation13], 0 }
   0xc   :  { %25 = vsyncpa [#allocation13 + $0x1], 0 }
   0xd   :  { %26 = vsyncpa [#allocation5], 0 }
   0xe   :  { %28 = vsyncpa [#allocation5 + $0x1], 0 }
   0xf   :  { %29 = vsyncpa [#allocation17], 0  ;;  %s3230_s27 = smov 0   ;;  %s3232_s28 = smov 0  }
  0x10   :  { %s3234_s29 = smov 0   ;;  %s3236_s30 = smov 0  }
  0x11   :  { %s3238_s9 = smov 0   ;;  %s3240_s10 = smov 0  }
  0x12 LB: > { %3956 = sst [smem:[#allocation25_spill]] %s3140_s27  ;;  %s3261_s11 = sadd.s32 4294967295, %s3160_s10   ;;  %s3160_s10 = sphi %s3240_s10, %s35_s10   ;;  %s3156_s9 = sphi %s3238_s9, %s4003_s9   ;;  %s3152_s30 = sphi %s3236_s30, %s4002_s30   ;;  %s3148_s29 = sphi %s3234_s29, %s4006_s29   ;;  %s3144_s28 = sphi %s3232_s28, %s4005_s28   ;;  %s3140_s27 = sphi %s3230_s27, %s4004_s27  }
  0x13   : > { %3957 = sst [smem:[#allocation26_spill]] %s3156_s9  ;;  %s2429_s12 = sadd.s32 4294967294, %s3160_s10  }
  0x14   : > { %3958 = sst [smem:[#allocation27_spill]] %s3160_s10  ;;  %p63_p0 = scmp.ne.s32.totalorder %s3148_s29, %s3144_s28 }
  0x15   : > { %p64_p1 = scmp.eq.s32.totalorder %s3160_s10, 0  ;;  %p69_p2 = scmp.ne.s32.totalorder %s3144_s28, %s3140_s27 }
  0x16   : > { %p3936_p3 = scmp.eq.s32.totalorder %s3261_s11, 0  ;;  %p3934_p4 = scmp.eq.s32.totalorder %s3261_s11, 1 }
  0x17   : > { %p3272_p5 = por %p64_p1, %p63_p0  ;;  %p267_p6 = scmp.eq.s32.totalorder %s2429_s12, 1 }
  0x18   : > { %p3278_p7 = por %p3936_p3, %p69_p2  ;;  %p3284_p8 = por %p3934_p4, %p63_p0 }
  0x19   : > { %p3288_p9 = por %p267_p6, %p69_p2  ;;  %p2430_p10 = scmp.ge.s32.totalorder %s3160_s10, 1 }
  0x1a   : > { %s3960_s15 = scalar_select %p3278_p7, 1, 0 }
  0x1b   : > { %s3961_s16 = scalar_select %p3284_p8, 1, 0 }
  0x1c   : > { %s3962_s17 = scalar_select %p3288_p9, 1, 0 }
  0x1d   : > { %p300_p11 = scmp.lt.s32.totalorder %s3160_s10, 3  ;;  %s3166_s19 = smov [#allocation14]  }
  0x1e   : > { %3963 = sst [smem:[#allocation28_spill]] %s3962_s17  ;;  %s316_s20 = sshll.u32 %s3166_s19, 4  ;;  %s3298_s20 = int_to_ptr.vmem [resolvable:$true] %s316_s20 }
  0x1f   : > { %p3294_p12 = pnand %p2430_p10, %p300_p11  ;;  %p2739_p1 = scmp.lt.s32.totalorder %s3160_s10, 2 }
  0x20   : > { %s44_s23 = sadd.s32 1, %s3156_s9  ;;  %s3968_s6 = sld [smem:[#allocation33_spill]] }
  0x21   : > { %s3964_s18 = scalar_select %p3294_p12, 1, 0 }
  0x22   : > { %p2711_p13 = pneg %p3294_p12  ;;  %p3312_p6 = pnand %p2739_p1, %p3272_p5 }
  0x23   : > { %p3317_p10 = scmp.ge.s32.totalorder %s44_s23, 2 }
  0x24   : > { %p3306_p2 = pnand %p2711_p13, %p3936_p3 }
  0x25   : > { %s3966_s22 = scalar_select %p3312_p6, 1, 0 }
  0x26   : > { %s3967_s24 = scalar_select %p3317_p10, 1, 0 }
  0x27   : > { %s2820_s12 = scalar_lea.hbm %s3968_s6, 1024  ;;  %p2822_p13 = pneg %p3306_p2 }
  0x28   : > { %p2821_p11 = scmp.ne.s32.totalorder %s3968_s6, %s2820_s12  ;;  %p2827_p1 = scmp.lt.u32.totalorder %s2820_s12, %s3968_s6 }
  0x2a   : > { %p2823_p0 = pnand %p2822_p13, %p2821_p11 }
  0x2c   : > { %p2824_p5 = pneg %p2823_p0 }
  0x2e   : > { %p2829_p4 = pnand %p2827_p1, %p2824_p5 }
  0x30   : > { %2832 = shalt.err (!%p2829_p4)
}
  0x31   : > { %s2833_s27 = scalar_lea.vmem %s3298_s20, 1024  ;;  %p2841_p7 = scmp.lt.s32.totalorder %s3298_s20, %s3298_s20 }
  0x32   : > { %p2834_p3 = scmp.ne.s32.totalorder %s3298_s20, %s2833_s27  ;;  %p2842_p12 = scmp.lt.s32.totalorder %s2833_s27, %s2833_s27 }
  0x34   : > { %p2836_p9 = pnand %p2834_p3, %p2822_p13  ;;  %p2843_p6 = por %p2842_p12, %p2841_p7 }
  0x36   : > { %p2837_p8 = pneg %p2836_p9 }
  0x38   : > { %p2844_p10 = pnand %p2843_p6, %p2837_p8 }
  0x3a   : > { %2847 = shalt.err (!%p2844_p10)
}
  0x3b   : > { %s3943_s13 = smov 128   ;;  %s3945_s17 = smov 8  }
  0x3c   : > { %2714 = dma.hbm_to_vmem [thread:$0]  (!%p3306_p2), %s3968_s6, 1024, %s3298_s20, [#allocation13], %s3943_s13, %s3943_s13, %s3945_s17  }
  0x3d   : > { %s3942_s26 = sand.u32 1, %s3148_s29   ;;  %p3969_p3 = scmp.ne.s32.totalorder %s3967_s24, 0 }
  0x3e   : > { %s3352_s12 = sshll.u32 %s3942_s26, 4  ;;  %s3355_s19 = sshll.u32 %s3156_s9, 7 }
  0x3f   : > { %s4008_s23 = smov (%p3969_p3, %s44_s23), 0  ;;  %s3360_s14 = sand.u32 1, %s3160_s10  }
  0x40   : > { %3970 = sst [smem:[#allocation29_spill]] %s4008_s23  ;;  %s52_s21 = ssub.s32 %s3156_s9, %s4008_s23 }
  0x41   : > { %p54_p4 = scmp.eq.s32.totalorder %s52_s21, 0  ;;  %s3971_s8 = sadd.s32 1, %s3148_s29 }
  0x42   : > { %s3973_s1 = sld [smem:[#allocation31_spill]]  ;;  %s357_s26 = scalar_lea.vmem [#allocation6], %s3352_s12 }
  0x43   : > { %s3365_s20 = scalar_select %p54_p4, %s3148_s29, %s3971_s8  }
  0x44   : > { %s366_s13 = sshll.u32 %s357_s26, 4  ;;  %p3974_p8 = scmp.ne.s32.totalorder %s3966_s22, 0  ;;  %s3374_s13 = int_to_ptr.vmem [resolvable:$true] %s366_s13 }
  0x45   : > { %3972 = sst [smem:[#allocation30_spill]] %s3365_s20 }
  0x46   : > { %p3381_p9 = pneg %p3974_p8 }
  0x48   : > { %s3371_s25 = scalar_lea.hbm %s3973_s1, %s3355_s19  ;;  %s2853_s6 = scalar_lea.hbm %s3973_s1, 512 }
  0x49   : > { %s2848_s17 = scalar_lea.hbm %s3371_s25, 256  ;;  %p2854_p2 = scmp.lt.u32.totalorder %s3371_s25, %s3973_s1 }
  0x4a   : > { %p2849_p7 = scmp.ne.s32.totalorder %s3371_s25, %s2848_s17  ;;  %p2855_p6 = scmp.lt.u32.totalorder %s2853_s6, %s2848_s17 }
  0x4b   : > { %p2857_p11 = scmp.lt.u32.totalorder %s2848_s17, %s3371_s25 }
  0x4c   : > { %p2851_p12 = pnand %p3381_p9, %p2849_p7  ;;  %p2856_p10 = por %p2855_p6, %p2854_p2 }
  0x4e   : > { %p2852_p0 = pneg %p2851_p12  ;;  %p2858_p13 = por %p2857_p11, %p2856_p10 }
  0x50   : > { %p2859_p5 = pnand %p2858_p13, %p2852_p0 }
  0x52   : > { %2862 = shalt.err (!%p2859_p5)
}
  0x53   : > { %s2863_s21 = scalar_lea.vmem %s3374_s13, 256  ;;  %s3169_s27 = smov [#allocation6]  }
  0x54   : > { %p2864_p1 = scmp.ne.s32.totalorder %s3374_s13, %s2863_s21  ;;  %s2868_s24 = sshll.u32 %s3169_s27, 4  ;;  %s2869_s24 = int_to_ptr.vmem [resolvable:$false] %s2868_s24 }
  0x55   : > { %s2870_s23 = scalar_lea.vmem %s2869_s24, 512  ;;  %p2871_p7 = scmp.lt.s32.totalorder %s3374_s13, %s2869_s24 }
  0x56   : > { %p2866_p3 = pnand %p2864_p1, %p3381_p9  ;;  %p2872_p12 = scmp.lt.s32.totalorder %s2870_s23, %s2863_s21 }
  0x58   : > { %p2867_p4 = pneg %p2866_p3  ;;  %p2873_p2 = por %p2872_p12, %p2871_p7 }
  0x5a   : > { %p2874_p6 = pnand %p2873_p2, %p2867_p4 }
  0x5c   : > { %2877 = shalt.err (!%p2874_p6)
}
  0x5d   : > { %s3170_s6 = smov 256   ;;  %s3976_s17 = smov 8  }
  0x5e   : > { %s3977_s26 = smov 128   ;;  %s3978_s1 = scalar_lea.sflag [#allocation7], %s3360_s14 }
  0x5f   : > { %2721 = dma.hbm_to_vmem [thread:$0]  (!%p3974_p8), %s3371_s25, 256, %s3374_s13, %s3978_s1, %s3170_s6, %s3977_s26, %s3976_s17  }
  0x60   : > { %s3979_s3 = sld [smem:[#allocation32_spill]]  ;;  %s403_s23 = scalar_lea.vmem [#allocation9], %s3352_s12 }
  0x61   : > { %s412_s9 = sshll.u32 %s403_s23, 4  ;;  %s3951_s20 = scalar_lea.sflag [#allocation10], %s3360_s14  ;;  %s3416_s9 = int_to_ptr.vmem [resolvable:$true] %s412_s9 }
  0x66   : > { %s3413_s24 = scalar_lea.hbm %s3979_s3, %s3355_s19  ;;  %s2883_s25 = scalar_lea.hbm %s3979_s3, 512 }
  0x67   : > { %s2878_s10 = scalar_lea.hbm %s3413_s24, 256  ;;  %p2884_p13 = scmp.lt.u32.totalorder %s3413_s24, %s3979_s3 }
  0x68   : > { %p2879_p0 = scmp.ne.s32.totalorder %s3413_s24, %s2878_s10  ;;  %p2885_p5 = scmp.lt.u32.totalorder %s2883_s25, %s2878_s10 }
  0x69   : > { %p2887_p3 = scmp.lt.u32.totalorder %s2878_s10, %s3413_s24 }
  0x6a   : > { %p2881_p10 = pnand %p2879_p0, %p3381_p9  ;;  %p2886_p1 = por %p2885_p5, %p2884_p13 }
  0x6c   : > { %p2882_p11 = pneg %p2881_p10  ;;  %p2888_p4 = por %p2887_p3, %p2886_p1 }
  0x6e   : > { %p2889_p7 = pnand %p2888_p4, %p2882_p11 }
  0x70   : > { %2892 = shalt.err (!%p2889_p7)
}
  0x71   : > { %s2893_s23 = scalar_lea.vmem %s3416_s9, 256  ;;  %s3171_s1 = smov [#allocation9]  }
  0x72   : > { %p2894_p12 = scmp.ne.s32.totalorder %s3416_s9, %s2893_s23  ;;  %s2898_s13 = sshll.u32 %s3171_s1, 4  ;;  %s2899_s13 = int_to_ptr.vmem [resolvable:$false] %s2898_s13 }
  0x73   : > { %s2900_s27 = scalar_lea.vmem %s2899_s13, 512  ;;  %p2901_p0 = scmp.lt.s32.totalorder %s3416_s9, %s2899_s13 }
  0x74   : > { %p2896_p2 = pnand %p2894_p12, %p3381_p9  ;;  %p2902_p10 = scmp.lt.s32.totalorder %s2900_s27, %s2893_s23 }
  0x76   : > { %p2897_p6 = pneg %p2896_p2  ;;  %p2903_p13 = por %p2902_p10, %p2901_p0 }
  0x78   : > { %p2904_p5 = pnand %p2903_p13, %p2897_p6 }
  0x7a   : > { %2907 = shalt.err (!%p2904_p5)
}
  0x7b   : > { %2727 = dma.hbm_to_vmem [thread:$0]  (!%p3974_p8), %s3413_s24, 256, %s3416_s9, %s3951_s20, %s3170_s6, %s3977_s26, %s3976_s17  }
  0x7c   : > { %s3449_s21 = scalar_lea.hbm %s3924_s0, %s3355_s19  ;;  %s334_s23 = scalar_lea.vmem [#allocation3], %s3352_s12 }
  0x7d   : > { %s343_s1 = sshll.u32 %s334_s23, 4  ;;  %s3980_s13 = sand.u32 1, %s3148_s29   ;;  %s3452_s1 = int_to_ptr.vmem [resolvable:$true] %s343_s1 }
  0x7e   : > { %s3456_s27 = scalar_lea.sflag [#allocation4], %s3980_s13  ;;  %s2908_s3 = scalar_lea.hbm %s3449_s21, 256 }
  0x7f   : > { %p2909_p11 = scmp.ne.s32.totalorder %s3449_s21, %s2908_s3  ;;  %s2913_s10 = scalar_lea.hbm %s3924_s0, 512 }
  0x80   : > { %p2914_p4 = scmp.lt.u32.totalorder %s3449_s21, %s3924_s0  ;;  %p2915_p7 = scmp.lt.u32.totalorder %s2913_s10, %s2908_s3 }
  0x81   : > { %p2911_p1 = pnand %p2909_p11, %p3381_p9  ;;  %p2917_p2 = scmp.lt.u32.totalorder %s2908_s3, %s3449_s21 }
  0x82   : > { %p2916_p12 = por %p2915_p7, %p2914_p4 }
  0x83   : > { %p2912_p3 = pneg %p2911_p1 }
  0x84   : > { %p2918_p6 = por %p2917_p2, %p2916_p12 }
  0x86   : > { %p2919_p0 = pnand %p2918_p6, %p2912_p3 }
  0x88   : > { %2922 = shalt.err (!%p2919_p0)
}
  0x89   : > { %s2923_s23 = scalar_lea.vmem %s3452_s1, 256  ;;  %s3172_s13 = smov [#allocation3]  }
  0x8a   : > { %p2924_p10 = scmp.ne.s32.totalorder %s3452_s1, %s2923_s23  ;;  %s2928_s9 = sshll.u32 %s3172_s13, 4  ;;  %s2929_s9 = int_to_ptr.vmem [resolvable:$false] %s2928_s9 }
  0x8b   : > { %s2930_s20 = scalar_lea.vmem %s2929_s9, 512  ;;  %p2931_p11 = scmp.lt.s32.totalorder %s3452_s1, %s2929_s9 }
  0x8c   : > { %p2926_p13 = pnand %p2924_p10, %p3381_p9  ;;  %p2932_p1 = scmp.lt.s32.totalorder %s2930_s20, %s2923_s23 }
  0x8e   : > { %p2927_p5 = pneg %p2926_p13  ;;  %p2933_p4 = por %p2932_p1, %p2931_p11 }
  0x90   : > { %p2934_p7 = pnand %p2933_p4, %p2927_p5 }
  0x92   : > { %2937 = shalt.err (!%p2934_p7)
}
  0x93   : > { %2718 = dma.hbm_to_vmem [thread:$0]  (!%p3974_p8), %s3449_s21, 256, %s3452_s1, %s3456_s27, %s3170_s6, %s3977_s26, %s3976_s17  }
  0x94   : > { %s3487_s10 = scalar_lea.hbm %s3926_s2, %s3355_s19  ;;  %s380_s25 = scalar_lea.vmem [#allocation8], %s3352_s12 }
  0x95   : > { %s389_s23 = sshll.u32 %s380_s25, 4  ;;  %s2938_s13 = scalar_lea.hbm %s3487_s10, 256  ;;  %s3490_s23 = int_to_ptr.vmem [resolvable:$true] %s389_s23 }
  0x96   : > { %p2939_p3 = scmp.ne.s32.totalorder %s3487_s10, %s2938_s13  ;;  %s2943_s1 = scalar_lea.hbm %s3926_s2, 512 }
  0x97   : > { %p2944_p6 = scmp.lt.u32.totalorder %s3487_s10, %s3926_s2  ;;  %p2945_p0 = scmp.lt.u32.totalorder %s2943_s1, %s2938_s13 }
  0x98   : > { %p2941_p12 = pnand %p2939_p3, %p3381_p9  ;;  %p2947_p13 = scmp.lt.u32.totalorder %s2938_s13, %s3487_s10 }
  0x99   : > { %p2946_p10 = por %p2945_p0, %p2944_p6 }
  0x9a   : > { %p2942_p2 = pneg %p2941_p12 }
  0x9b   : > { %p2948_p5 = por %p2947_p13, %p2946_p10 }
  0x9d   : > { %p2949_p11 = pnand %p2948_p5, %p2942_p2 }
  0x9f   : > { %2952 = shalt.err (!%p2949_p11)
}
  0xa0   : > { %s2953_s3 = scalar_lea.vmem %s3490_s23, 256  ;;  %s3173_s24 = smov [#allocation8]  }
  0xa1   : > { %p2954_p1 = scmp.ne.s32.totalorder %s3490_s23, %s2953_s3  ;;  %s2958_s25 = sshll.u32 %s3173_s24, 4  ;;  %s2959_s25 = int_to_ptr.vmem [resolvable:$false] %s2958_s25 }
  0xa2   : > { %s2960_s9 = scalar_lea.vmem %s2959_s25, 512  ;;  %p2961_p3 = scmp.lt.s32.totalorder %s3490_s23, %s2959_s25 }
  0xa3   : > { %p2956_p4 = pnand %p2954_p1, %p3381_p9  ;;  %p2962_p12 = scmp.lt.s32.totalorder %s2960_s9, %s2953_s3 }
  0xa5   : > { %p2957_p7 = pneg %p2956_p4  ;;  %p2963_p6 = por %p2962_p12, %p2961_p3 }
  0xa7   : > { %p2964_p0 = pnand %p2963_p6, %p2957_p7 }
  0xa9   : > { %2967 = shalt.err (!%p2964_p0)
}
  0xaa   : > { %s3981_s13 = scalar_lea.sflag [#allocation7], %s3360_s14  ;;  %s3522_s27 = scalar_lea.hbm %s3928_s4, %s3355_s19 }
  0xab   : > { %2724 = dma.hbm_to_vmem [thread:$0]  (!%p3974_p8), %s3487_s10, 256, %s3490_s23, %s3981_s13, %s3170_s6, %s3977_s26, %s3976_s17  }
  0xac   : > { %s426_s20 = scalar_lea.vmem [#allocation11], %s3352_s12  ;;  %s2968_s24 = scalar_lea.hbm %s3522_s27, 256 }
  0xad   : > { %s435_s3 = sshll.u32 %s426_s20, 4  ;;  %p2969_p2 = scmp.ne.s32.totalorder %s3522_s27, %s2968_s24  ;;  %s3525_s3 = int_to_ptr.vmem [resolvable:$true] %s435_s3 }
  0xae   : > { %s2973_s23 = scalar_lea.hbm %s3928_s4, 512  ;;  %p2974_p5 = scmp.lt.u32.totalorder %s3522_s27, %s3928_s4 }
  0xaf   : > { %p2971_p10 = pnand %p2969_p2, %p3381_p9  ;;  %p2975_p11 = scmp.lt.u32.totalorder %s2973_s23, %s2968_s24 }
  0xb0   : > { %p2977_p4 = scmp.lt.u32.totalorder %s2968_s24, %s3522_s27 }
  0xb1   : > { %p2972_p13 = pneg %p2971_p10  ;;  %p2976_p1 = por %p2975_p11, %p2974_p5 }
  0xb3   : > { %p2978_p7 = por %p2977_p4, %p2976_p1 }
  0xb5   : > { %p2979_p3 = pnand %p2978_p7, %p2972_p13 }
  0xb7   : > { %2982 = shalt.err (!%p2979_p3)
}
  0xb8   : > { %s2983_s21 = scalar_lea.vmem %s3525_s3, 256  ;;  %s3174_s1 = smov [#allocation11]  }
  0xb9   : > { %p2984_p12 = scmp.ne.s32.totalorder %s3525_s3, %s2983_s21  ;;  %s2988_s20 = sshll.u32 %s3174_s1, 4  ;;  %s2989_s20 = int_to_ptr.vmem [resolvable:$false] %s2988_s20 }
  0xba   : > { %s2990_s25 = scalar_lea.vmem %s2989_s20, 512  ;;  %p2991_p2 = scmp.lt.s32.totalorder %s3525_s3, %s2989_s20 }
  0xbb   : > { %p2986_p6 = pnand %p2984_p12, %p3381_p9  ;;  %p2992_p10 = scmp.lt.s32.totalorder %s2990_s25, %s2983_s21 }
  0xbd   : > { %p2987_p0 = pneg %p2986_p6  ;;  %p2993_p5 = por %p2992_p10, %p2991_p2 }
  0xbf   : > { %p2994_p11 = pnand %p2993_p5, %p2987_p0 }
  0xc1   : > { %2997 = shalt.err (!%p2994_p11)
}
  0xc2   : > { %s3982_s24 = scalar_lea.sflag [#allocation10], %s3360_s14  ;;  %s3557_s9 = scalar_lea.hbm %s3929_s5, %s3355_s19 }
  0xc3   : > { %2730 = dma.hbm_to_vmem [thread:$0]  (!%p3974_p8), %s3522_s27, 256, %s3525_s3, %s3982_s24, %s3170_s6, %s3977_s26, %s3976_s17  }
  0xc4   : > { %s449_s13 = scalar_lea.vmem [#allocation12], %s3352_s12  ;;  %s446_s1 = scalar_lea.sflag [#allocation13], %s3360_s14 }
  0xc5   : > { %s458_s21 = sshll.u32 %s449_s13, 4  ;;  %s2998_s20 = scalar_lea.hbm %s3557_s9, 256  ;;  %s3560_s21 = int_to_ptr.vmem [resolvable:$true] %s458_s21 }
  0xc6   : > { %p2999_p13 = scmp.ne.s32.totalorder %s3557_s9, %s2998_s20  ;;  %s3003_s25 = scalar_lea.hbm %s3929_s5, 512 }
  0xc7   : > { %p3004_p7 = scmp.lt.u32.totalorder %s3557_s9, %s3929_s5  ;;  %p3005_p3 = scmp.lt.u32.totalorder %s3003_s25, %s2998_s20 }
  0xc8   : > { %p3001_p1 = pnand %p2999_p13, %p3381_p9  ;;  %p3007_p6 = scmp.lt.u32.totalorder %s2998_s20, %s3557_s9 }
  0xc9   : > { %p3006_p12 = por %p3005_p3, %p3004_p7 }
  0xca   : > { %p3002_p4 = pneg %p3001_p1 }
  0xcb   : > { %p3008_p0 = por %p3007_p6, %p3006_p12 }
  0xcd   : > { %p3009_p2 = pnand %p3008_p0, %p3002_p4 }
  0xcf   : > { %3012 = shalt.err (!%p3009_p2)
}
  0xd0   : > { %s3013_s12 = scalar_lea.vmem %s3560_s21, 256  ;;  %s3175_s10 = smov [#allocation12]  }
  0xd1   : > { %p3014_p10 = scmp.ne.s32.totalorder %s3560_s21, %s3013_s12  ;;  %s3018_s23 = sshll.u32 %s3175_s10, 4  ;;  %s3019_s23 = int_to_ptr.vmem [resolvable:$false] %s3018_s23 }
  0xd2   : > { %s3020_s13 = scalar_lea.vmem %s3019_s23, 512  ;;  %p3021_p13 = scmp.lt.s32.totalorder %s3560_s21, %s3019_s23 }
  0xd3   : > { %p3016_p5 = pnand %p3014_p10, %p3381_p9  ;;  %p3022_p1 = scmp.lt.s32.totalorder %s3020_s13, %s3013_s12 }
  0xd5   : > { %p3017_p11 = pneg %p3016_p5  ;;  %p3023_p7 = por %p3022_p1, %p3021_p13 }
  0xd7   : > { %p3024_p3 = pnand %p3023_p7, %p3017_p11 }
  0xd9   : > { %3027 = shalt.err (!%p3024_p3)
}
  0xda   : > { %2733 = dma.hbm_to_vmem [thread:$0]  (!%p3974_p8), %s3557_s9, 256, %s3560_s21, %s446_s1, %s3170_s6, %s3977_s26, %s3976_s17  }
  0xdb   : > { %p3983_p9 = scmp.ne.s32.totalorder %s3964_s18, 0 }
  0xdc   : > { %s3592_s8 = sand.u32 (!%p3983_p9), 1, %s3144_s28   ;;  %p3984_p4 = scmp.ne.s32.totalorder (!%p3983_p9), %s3960_s15, 0 }
  0xdd   : > { %470 = sbr.rel (%p3983_p9) target bundleno = 2222 (0x8ae), region = 48  ;;  %s3595_s20 = sshll.u32 (!%p3983_p9), %s3592_s8, 4 }
  0xde   : > { %s473_s22 = scalar_lea.sflag (!%p3983_p9), [#allocation4], %s3592_s8  ;;  %s476_s27 = scalar_lea.vmem (!%p3983_p9), [#allocation3], %s3595_s20 }
  0xe4   : > { %3111 = dma.done.wait (%p3984_p4), %s473_s22, 256  }
  0xe5   : > { %3113 = vsyncadd (%p3984_p4), %s473_s22, 4294967040  ;;  %s481_s18 = sand.u32 1, %s3261_s11   ;;  %s485_s6 = scalar_lea.vmem [#allocation6], %s3595_s20 }
  0xe6   : > { %s482_s14 = scalar_lea.sflag [#allocation7], %s481_s18 }
  0xe7   : > { %3115 = dma.done.wait (%p3984_p4), %s482_s14, 512  }
  0xe8   : > { %3117 = vsyncadd (%p3984_p4), %s482_s14, 4294966784  ;;  %s494_s17 = scalar_lea.vmem [#allocation8], %s3595_s20  ;;  %s500_s26 = scalar_lea.sflag [#allocation10], %s481_s18 }
  0xe9   : > { %s503_s9 = scalar_lea.vmem [#allocation9], %s3595_s20 }
  0xea   : > { %3119 = dma.done.wait (%p3984_p4), %s500_s26, 512  }
  0xeb   : > { %3121 = vsyncadd (%p3984_p4), %s500_s26, 4294966784  ;;  %s512_s21 = scalar_lea.vmem [#allocation11], %s3595_s20  ;;  %s518_s1 = scalar_lea.sflag [#allocation13], %s481_s18 }
  0xec   : > { %s521_s3 = scalar_lea.vmem [#allocation12], %s3595_s20 }
  0xed   : > { %3123 = dma.done.wait (%p3984_p4), %s518_s1, 256  }
  0xee   : > { %3125 = vsyncadd (%p3984_p4), %s518_s1, 4294967040  ;;  %p3985_p8 = scmp.eq.s32.totalorder %s3261_s11, 0 }
  0xf0   : > { %3127 = dma.done.wait (%p3985_p8), [#allocation13], 1024   ;;  %p3986_p12 = pmov %p3985_p8 }
  0xf1   : > { %s580_s25 = scalar_lea.vmem [#allocation15], %s3595_s20  ;;  %p2454_p6 = scmp.ne.s32.totalorder %s3152_s30, 0 }
  0xf2   : > { %3129 = vsyncadd (%p3986_p12), [#allocation13], 4294966272  ;;  %v596_v0 = vld [vmem:[#allocation14] sm:$0xff] (!%p2454_p6)  ;;  %vm604_vm0 = vcmask (!%p2454_p6), 261120   ;;  %v597_v1 = vld [vmem:[#allocation14 + $0x8] sm:$0xff] (!%p2454_p6) }
  0xf3   : > { %595 = sbr.rel (%p2454_p6) target bundleno = 250 (0xfa), region = 80  ;;  %v598_v2 = vld [vmem:[#allocation14 + $0x10] sm:$0xff] (!%p2454_p6)  ;;  %605 = vst.msk [vmem:[#allocation2] sm:$0xff] (!%p2454_p6), %vm604_vm0, %v596_v0  ;;  %606 = vst.msk [vmem:[#allocation2 + $0x8] sm:$0xff] (!%p2454_p6), %vm604_vm0, %v597_v1  ;;  %v599_v3 = vld [vmem:[#allocation14 + $0x18] sm:$0xff] (!%p2454_p6) }
  0xf4   : > { %607 = vst.msk [vmem:[#allocation2 + $0x10] sm:$0xff] (!%p2454_p6), %vm604_vm0, %v598_v2  ;;  %v600_v4 = vld [vmem:[#allocation14 + $0x20] sm:$0xff] (!%p2454_p6)  ;;  %v601_v5 = vld [vmem:[#allocation14 + $0x28] sm:$0xff] (!%p2454_p6)  ;;  %608 = vst.msk [vmem:[#allocation2 + $0x18] sm:$0xff] (!%p2454_p6), %vm604_vm0, %v599_v3 }
  0xf5   : > { %609 = vst.msk [vmem:[#allocation2 + $0x20] sm:$0xff] (!%p2454_p6), %vm604_vm0, %v600_v4  ;;  %610 = vst.msk [vmem:[#allocation2 + $0x28] sm:$0xff] (!%p2454_p6), %vm604_vm0, %v601_v5  ;;  %v602_v6 = vld [vmem:[#allocation14 + $0x30] sm:$0xff] (!%p2454_p6)  ;;  %v603_v7 = vld [vmem:[#allocation14 + $0x38] sm:$0xff] (!%p2454_p6) }
  0xf6   : > { %611 = vst.msk [vmem:[#allocation2 + $0x30] sm:$0xff] (!%p2454_p6), %vm604_vm0, %v602_v6  ;;  %612 = vst.msk [vmem:[#allocation2 + $0x38] sm:$0xff] (!%p2454_p6), %vm604_vm0, %v603_v7 }
  0xfa PF: > { %v613_v8 = vlaneseq  ;;  %v3176_v11 = vmov 0.0   ;;  %s3644_s15 = smov 0  }
  0xfc   : > { %v3627_v9 = vshrl.u32 %v613_v8, 7  ;;  %v3629_v10 = vand.u32 127, %v613_v8 }
  0xfe   : > { %vm617_vm1 = vcmp.le.s32.totalorder %v3629_v10, %v3627_v9  ;;  %vm618_vm2 = vcmp.lt.s32.totalorder %v3629_v10, %v3627_v9  ;;  %vm621_vm3 = vcmp.eq.s32.totalorder %v3629_v10, %v3627_v9 }
  0xff   : > { %v3640_v12 = vsel %vm617_vm1, 1.0, %v3176_v11  ;;  %v3642_v13 = vsel %vm621_vm3, 1.0, %v3176_v11 }
 0x100 LB: >> { %v3177_v14 = vmov 0.0   ;;  %vm3178_vm4 = vmmov 0   ;;  %s3653_s19 = sshll.u32 %s3164_s15, 3  ;;  %vm651_vm5 = vcmask 64512   ;;  %vm735_vm6 = vcmask 261120   ;;  %s2458_s18 = sshll.u32 %s3164_s15, 5  ;;  %s3164_s15 = sphi %s3644_s15, %s629_s15  }
 0x101   : >> { %2551 = vmatprep.subr.mxu0 %v3177_v14  ;;  %2553 = vmatprep.mubr.msk.f32.mxu0 %vm3178_vm4, %v3177_v14  ;;  %s633_s24 = scalar_lea.vmem %s485_s6, %s3653_s19 [#allocation6]  ;;  %s641_s12 = scalar_lea.vmem %s521_s3, %s3653_s19 [#allocation12]  ;;  %v3179_v59 = vmov 0.0|0.0   ;;  %vm3773_vm7 = vmpackc.low %vm735_vm6, %vm735_vm6 }
 0x102   : >> { %2566 = vmatprep.subr.mxu1 %v3177_v14  ;;  %2568 = vmatprep.mubr.msk.f32.mxu1 %vm3178_vm4, %v3177_v14  ;;  %v634_v15 = vld [vmem:[%s633_s24] sm:$0xff]  ;;  %s639_s10 = scalar_lea.vmem %s512_s21, %s3653_s19 [#allocation11]  ;;  %s631_s23 = scalar_lea.vmem %s476_s27, %s3653_s19 [#allocation3] }
 0x103   : >> { %2812 = vlog2.f32 %v634_v15  ;;  %v642_v24 = vld [vmem:[%s641_s12] sm:$0xff]  ;;  %s635_s13 = scalar_lea.vmem %s494_s17, %s3653_s19 [#allocation8]  ;;  %s637_s22 = scalar_lea.vmem %s503_s9, %s3653_s19 [#allocation9] }
 0x104   : >> { %2814 = vrcp.f32 %v634_v15  ;;  %v640_v27 = vld [vmem:[%s639_s10] sm:$0xff]  ;;  %s3761_s14 = scalar_lea.vmem [#allocation2], %s2458_s18  ;;  %s2123_s26 = scalar_lea.vmem %s580_s25, %s3653_s19 [#allocation15] }
 0x105   : >> { %v632_v28 = vld [vmem:[%s631_s23] sm:$0xff]  ;;  %v646_v58 = vld [vmem:[%s3761_s14 + $0x8] sm:$0xff]  ;;  %v647_v62 = vld [vmem:[%s3761_s14 + $0x10] sm:$0xff]  ;;  %s629_s15 = sadd.s32 1, %s3164_s15  }
 0x106   : >> { %v636_v29 = vld [vmem:[%s635_s13] sm:$0xff]  ;;  %v648_v63 = vld [vmem:[%s3761_s14 + $0x18] sm:$0xff]  ;;  %p626_p0 = scmp.ge.s32.totalorder %s629_s15, 2  }
 0x107   : >> { %v3742_v45 = vld [vmem:[%s637_s22] sm:$0xff]  ;;  %v2664_v0 = vpack.c.bf16 %v648_v63, %v647_v62  ;;  %p2496_p2 = scmp.ne.s32.totalorder (%p626_p0), %s3152_s30, 1 }
 0x108   : >> { %1845 = vxpose.xlu0.b32.start.end [1/1] (short) (narrow) %v3742_v45, 32  ;;  %v3764_v57 = vld [vmem:[%s3761_s14] sm:$0xff] }
 0x109   : >> { %v2660_v60 = vpack.c.bf16 %v646_v58, %v3764_v57 }
 0x10d   : >> { %v2813_v16 = vpop.eup %2812 }
 0x10e   : >> { %v650_v17 = vmul.f32 0.6931472, %v2813_v16  ;;  %v2815_v21 = vpop.eup %2814 }
 0x110   : >> { %2552 = vmatpush3.msra.mxu0 %v650_v17 }
 0x111   : >> { %2554 = vmatmul.mubr.msk.f32.vlgmr.msra.gmra.mrb[0].mxu0 %vm651_vm5, %v3640_v12  ;;  %2556 = vmatprep.subr.mxu0 %v3177_v14 }
 0x112   : >> { %2558 = vmatprep.mubr.msk.f32.mxu0 %vm3178_vm4, %v3177_v14 }
 0x188   : >> { %v1861_v1 = vpop.trf.xlu0 }
 0x18c   : >> { %v1862_v4 = vpop.trf.xlu0 }
 0x190   : >> { %v1863_v5 = vpop.trf.xlu0 }
 0x194   : >> { %v1864_v6 = vpop.trf.xlu0 }
 0x1e4   : >> { %v721_v18 = vpop.f32.mrb[0].mxu0 }
 0x1e5   : >> { %v725_v19 = vmul.f32 1.442695, %v721_v18  ;;  %v2555_v20 = vpop.f32.mrb[1].mxu0 }
 0x1e7   : >> { %2816 = vpow2.f32 %v725_v19 }
 0x1f1   : >> { %v3666_v22 = vpop.eup %2816 }
 0x1f2   : >> { %2818 = vrcp.f32 %v3666_v22  ;;  %v728_v23 = vmul.f32 %v3666_v22, %v2815_v21  ;;  %v3690_v31 = vmul.f32 %v3666_v22, %v632_v28  ;;  %v2113_v21 = vsub.s32 7, %v3627_v9 }
 0x1f4   : >> { %v731_v30 = vmul.f32 %v728_v23, %v640_v27 }
 0x1fc   : >> { %v2819_v25 = vpop.eup %2818 }
 0x1fd   : >> { %v3682_v26 = vmul.f32 %v2819_v25, %v642_v24  ;;  %v3693_v32 = vmul.f32 %v2819_v25, %v636_v29  ;;  %v2114_v25 = vrot.slane %v3666_v22, %v2113_v21 }
 0x1ff   : >> { %2557 = vmatpush3.xpose.msk.msra.mxu0 %vm735_vm6, %v3682_v26  ;;  %2567 = vmatpush3.xpose.msk.msra.mxu1 %vm735_vm6, %v3682_v26 }
 0x200   : >> { %2561 = vmatprep.subr.mxu0 %v3177_v14  ;;  %2576 = vmatprep.subr.mxu1 %v3177_v14 }
 0x202   : >> { %2559 = vmatmul.mubr.msk.f32.vlgmr.msra.gmra.mrb[2].mxu0 %vm735_vm6, %v731_v30  ;;  %2569 = vmatmul.mubr.msk.f32.vlgmr.msra.gmra.mrb[0].mxu1 %vm735_vm6, %v3690_v31 }
 0x203   : >> { %2562 = vmatpush3.xpose.msk.msra.mxu0 %vm735_vm6, %v3693_v32  ;;  %2563 = vmatprep.mubr.msk.f32.mxu0 %vm3178_vm4, %v3177_v14 }
 0x204   : >> { %2571 = vmatprep.subr.mxu0 %v3177_v14  ;;  %2578 = vmatprep.mubr.msk.f32.mxu1 %vm3178_vm4, %v3177_v14 }
 0x206   : >> { %2564 = vmatmul.mubr.msk.f32.vlgmr.msra.gmra.mrb[4].mxu0 %vm735_vm6, %v731_v30 }
 0x207   : >> { %2572 = vmatpush3.xpose.msk.msra.mxu0 %vm735_vm6, %v3693_v32  ;;  %2573 = vmatprep.mubr.msk.f32.mxu0 %vm3178_vm4, %v3177_v14 }
 0x208   : >> { %2581 = vmatprep.subr.mxu0 %v3177_v14 }
 0x20a   : >> { %2574 = vmatmul.mubr.msk.f32.vlgmr.msra.gmra.mrb[6].mxu0 %vm735_vm6, %v3690_v31 }
 0x20b   : >> { %2583 = vmatprep.mubr.msk.f32.mxu0 %vm3178_vm4, %v3177_v14 }
 0x2d5   : >> { %v808_v33 = vpop.f32.mrb[2].mxu0  ;;  %v3715_v34 = vpop.f32.mrb[0].mxu1 }
 0x2d6   : >> { %v812_v35 = vsel %vm618_vm2, %v808_v33, 0.0  ;;  %v2560_v36 = vpop.f32.mrb[3].mxu0  ;;  %v2570_v37 = vpop.f32.mrb[1].mxu1  ;;  %2577 = vmatpush3.msk.msra.mxu1 %vm618_vm2, %v808_v33  ;;  %v960_v8 = vsel %vm617_vm1, %v3715_v34, 0.0 }
 0x2d7   : >> { %2579 = vmatmul.mubr.msk.f32.vlgmr.msra.gmra.mrb[2].mxu1 %vm651_vm5, %v812_v35  ;;  %2586 = vmatprep.subr.mxu1 %v3177_v14  ;;  %v1032_v42 = vadd.f32 %v3642_v13, %v812_v35 }
 0x2d8   : >> { %2588 = vmatprep.mubr.msk.f32.mxu1 %vm3178_vm4, %v3177_v14 }
 0x2d9   : >> { %v882_v38 = vpop.f32.mrb[4].mxu0 }
 0x2da   : >> { %v2565_v39 = vpop.f32.mrb[5].mxu0  ;;  %v886_v51 = vsel %vm618_vm2, %v882_v38, 0.0 }
 0x2dd   : >> { %v3727_v40 = vpop.f32.mrb[6].mxu0 }
 0x2de   : >> { %v2575_v41 = vpop.f32.mrb[7].mxu0  ;;  %v1031_v15 = vsel %vm617_vm1, %v3727_v40, 0.0 }
 0x3aa   : >> { %v1102_v43 = vpop.f32.mrb[2].mxu1 }
 0x3ab   : >> { %v2580_v44 = vpop.f32.mrb[3].mxu1  ;;  %2582 = vmatpush3.msra.mxu0 %v1102_v43  ;;  %2587 = vmatpush3.msra.mxu1 %v1102_v43 }
 0x3ac   : >> { %2584 = vmatmul.mubr.msk.f32.vlgmr.msra.gmra.mrb[8].mxu0 %vm651_vm5, %v1032_v42  ;;  %2589 = vmatmul.mubr.msk.f32.vlgmr.msra.gmra.mrb[4].mxu1 %vm651_vm5, %v1102_v43 }
 0x3ad   : >> { %2596 = vmatprep.subr.mxu1 %v3177_v14  ;;  %2591 = vmatprep.subr.mxu0 %v3177_v14 }
 0x3ae   : >> { %2597 = vmatpush3.msra.mxu1 %v731_v30  ;;  %2593 = vmatprep.mubr.msk.f32.mxu0 %vm3178_vm4, %v3177_v14 }
 0x3af   : >> { %2598 = vmatprep.mubr.msk.f32.mxu1 %vm3178_vm4, %v3177_v14  ;;  %2606 = vmatprep.subr.mxu1 %v3177_v14 }
 0x47f   : >> { %v1175_v46 = vpop.f32.mrb[8].mxu0  ;;  %v1249_v47 = vpop.f32.mrb[4].mxu1 }
 0x480   : >> { %v1179_v48 = vadd.f32 %v1175_v46, %v1032_v42  ;;  %v2585_v49 = vpop.f32.mrb[9].mxu0  ;;  %v2590_v50 = vpop.f32.mrb[5].mxu1  ;;  %2592 = vmatpush3.msra.mxu0 %v1249_v47 }
 0x481   : >> { %2601 = vmatprep.subr.mxu0 %v3177_v14 }
 0x482   : >> { %2594 = vmatmul.mubr.msk.f32.vlgmr.msra.gmra.mrb[10].mxu0 %vm651_vm5, %v1179_v48 }
 0x483   : >> { %2602 = vmatpush3.msra.mxu0 %v3742_v45  ;;  %2603 = vmatprep.mubr.msk.f32.mxu0 %vm3178_vm4, %v3177_v14 }
 0x484   : >> { %2622 = vmatprep.subr.mxu0 %v3177_v14 }
 0x486   : >> { %2604 = vmatmul.mubr.msk.f32.vlgmr.msra.gmra.mrb[12].mxu0 %vm651_vm5, %v886_v51 }
 0x487   : >> { %2624 = vmatprep.mubr.msk.f32.mxu0 %vm3178_vm4, %v3177_v14 }
 0x555   : >> { %v1322_v52 = vpop.f32.mrb[10].mxu0 }
 0x556   : >> { %v1326_v53 = vadd.f32 %v1322_v52, %v1179_v48  ;;  %v2595_v54 = vpop.f32.mrb[11].mxu0 }
 0x558   : >> { %2599 = vmatmul.mubr.msk.f32.vlgmr.msra.gmra.mrb[6].mxu1 %vm651_vm5, %v1326_v53 }
 0x559   : >> { %v1469_v55 = vpop.f32.mrb[12].mxu0  ;;  %2608 = vmatprep.mubr.msk.f32.mxu1 %vm3178_vm4, %v3177_v14 }
 0x55a   : >> { %v2605_v56 = vpop.f32.mrb[13].mxu0  ;;  %2607 = vmatpush3.msra.mxu1 %v1469_v55 }
 0x55b   : >> { %2659 = vmatprep.subr.bf16.mxu1 %v3179_v59 }
 0x55c   : >> { %2609 = vmatmul.mubr.msk.f32.vlgmr.msra.gmra.mrb[8].mxu1 %vm651_vm5, %v1326_v53 }
 0x55d   : >> { %2619 = vmatprep.mubr.msk.f32.mxu1 %vm3178_vm4, %v3177_v14 }
 0x561   : >> { %2662 = vmatpush3.bf16.xpose.msk.msra.mxu1 %vm3773_vm7, %v2660_v60 }
 0x562   : >> { %2663 = vmatprep.subr.bf16.mxu1 %v3179_v59 }
 0x569   : >> { %2666 = vmatpush3.bf16.xpose.msk.msra.mxu1 %vm3773_vm7, %v2664_v0 }
 0x56a   : >> { %2643 = vmatprep.subr.mxu1 %v3693_v32 }
 0x62b   : >> { %v1396_v2 = vpop.f32.mrb[6].mxu1 }
 0x62c   : >> { %v2600_v3 = vpop.f32.mrb[7].mxu1  ;;  %2620 = vmatmul.mubr.msk.f32.vlgmr.msra.gmra.mrb[8].mxu1 %vm735_vm6, %v1396_v2 }
 0x62d   : >> { %2644 = vmatpush3.msra.mxu1 %v3693_v32  ;;  %2645 = vmatprep.mubr.msk.f32.mxu1 %vm651_vm5, %v1861_v1 }
 0x62e   : >> { %2651 = vmatprep.subr.mxu1 %v3682_v26 }
 0x630   : >> { %2646 = vmatmul.mubr.msk.f32.vlgmr.msra.gmra.mrb[10].mxu1 %vm651_vm5, %v1862_v4 }
 0x631   : >> { %2652 = vmatpush3.msra.mxu1 %v3682_v26  ;;  %2648 = vmatprep.mubr.msk.f32.mxu1 %vm651_vm5, %v1863_v5 }
 0x634   : >> { %2649 = vmatmul.mubr.msk.f32.gmra.mrb[12].mxu1 %vm651_vm5, %v1864_v6 }
 0x6ff   : >> { %v1624_v7 = vpop.f32.mrb[8].mxu1 }
 0x700   : >> { %1978 = vxpose.xlu0.b32.start.end [1/1] (short) (narrow) %v1624_v7, 32  ;;  %v2621_v11 = vpop.f32.mrb[9].mxu1  ;;  %2623 = vmatpush3.msra.mxu0 %v1624_v7 }
 0x701   : >> { %2625 = vmatmul.mubr.msk.f32.vlgmr.msra.gmra.mrb[14].mxu0 %vm651_vm5, %v960_v8  ;;  %2667 = vmatprep.subr.bf16.mxu0 %v3179_v59 }
 0x702   : >> { %2635 = vmatprep.mubr.msk.f32.mxu0 %vm3178_vm4, %v3177_v14 }
 0x707   : >> { %2670 = vmatpush3.bf16.xpose.msk.msra.mxu0 %vm3773_vm7, %v2660_v60 }
 0x708   : >> { %2671 = vmatprep.subr.bf16.mxu0 %v3179_v59 }
 0x70f   : >> { %2674 = vmatpush3.bf16.xpose.msk.msra.mxu0 %vm3773_vm7, %v2664_v0 }
 0x710   : >> { %2638 = vmatprep.subr.mxu0 %v3177_v14 }
 0x716   : >> { %2636 = vmatmul.mubr.msk.f32.vlgmr.msra.gmra.mrb[14].mxu0 %vm735_vm6, %v3690_v31 }
 0x717   : >> { %2639 = vmatpush3.msra.mxu0 %v3742_v45  ;;  %2640 = vmatprep.mubr.msk.f32.mxu0 %vm3178_vm4, %v3177_v14 }
 0x71e   : >> { %2641 = vmatmul.mubr.msk.f32.vlgmr.msra.gmra.mrb[14].mxu0 %vm651_vm5, %v1031_v15 }
 0x780   : >> { %v1994_v16 = vpop.trf.xlu0 }
 0x781   : >> { %2653 = vmatprep.mubr.msk.f32.mxu1 %vm651_vm5, %v1994_v16 }
 0x784   : >> { %v1995_v17 = vpop.trf.xlu0 }
 0x785   : >> { %2654 = vmatmul.mubr.msk.f32.vlgmr.msra.gmra.mrb[10].mxu1 %vm651_vm5, %v1995_v17 }
 0x788   : >> { %v1996_v18 = vpop.trf.xlu0 }
 0x789   : >> { %2656 = vmatprep.mubr.msk.f32.mxu1 %vm651_vm5, %v1996_v18 }
 0x78c   : >> { %v1997_v19 = vpop.trf.xlu0 }
 0x78d   : >> { %2657 = vmatmul.mubr.msk.f32.gmra.mrb[12].mxu1 %vm651_vm5, %v1997_v19 }
 0x7f1   : >> { %v1840_v14 = vpop.f32.mrb[14].mxu0 }
 0x7f2   : >> { %2124 = vst.msk [vmem:[%s2123_s26] sm:$0xff] %vm735_vm6, %v1840_v14  ;;  %v2642_v20 = vpop.f32.mrb[15].mxu0 }
 0x858   : >> { %v2655_v23 = vpop.f32.mrb[10].mxu1 }
 0x859   : >> { %v2675_v24 = vadd.f32 %v2655_v23, %v646_v58  ;;  %v2088_v26 = vpop.f32.mrb[11].mxu1 }
 0x85a   : >> { %v2676_v27 = vadd.f32 %v2088_v26, %v3764_v57 }
 0x85b   : >> { %v2116_v28 = vmul.f32 %v2675_v24, %v2114_v25 }
 0x85c   : >> { %v2115_v29 = vmul.f32 %v2676_v27, %v2114_v25 }
 0x85d   : >> { %2120 = vst.msk [vmem:[%s3761_s14 + $0x8] sm:$0xff] %vm735_vm6, %v2116_v28 }
 0x85e   : >> { %2119 = vst.msk [vmem:[%s3761_s14] sm:$0xff] %vm735_vm6, %v2115_v29 }
 0x860   : >> { %v2658_v30 = vpop.f32.mrb[12].mxu1  ;;  %628 = sbr.rel (!%p626_p0) target bundleno = 256 (0x100), region = 191 }
 0x861   : >> { %v2677_v31 = vadd.f32 %v2658_v30, %v648_v63  ;;  %v2098_v32 = vpop.f32.mrb[13].mxu1 }
 0x862   : >> { %v2678_v33 = vadd.f32 %v2098_v32, %v647_v62 }
 0x863   : >> { %v2118_v34 = vmul.f32 %v2677_v31, %v2114_v25 }
 0x864   : >> { %v2117_v35 = vmul.f32 %v2678_v33, %v2114_v25 }
 0x865   : >> { %2122 = vst.msk [vmem:[%s3761_s14 + $0x18] sm:$0xff] %vm735_vm6, %v2118_v34 }
 0x866   : >> { %2121 = vst.msk [vmem:[%s3761_s14 + $0x10] sm:$0xff] %vm735_vm6, %v2117_v35 }
 0x867   : > { %2128 = sbr.rel (%p2496_p2) target bundleno = 2162 (0x872), region = 91 }
 0x86d   : > { %v2129_v22 = vld [vmem:[#allocation2] sm:$0xff] (!%p2496_p2)  ;;  %v2130_v36 = vld [vmem:[#allocation2 + $0x8] sm:$0xff] (!%p2496_p2)  ;;  %v2131_v37 = vld [vmem:[#allocation2 + $0x10] sm:$0xff] (!%p2496_p2) }
 0x86e   : > { %2138 = vst.msk [vmem:[#allocation16] sm:$0xff] %vm735_vm6, %v2129_v22  ;;  %2139 = vst.msk [vmem:[#allocation16 + $0x8] sm:$0xff] %vm735_vm6, %v2130_v36  ;;  %v2132_v38 = vld [vmem:[#allocation2 + $0x18] sm:$0xff]  ;;  %v2133_v39 = vld [vmem:[#allocation2 + $0x20] sm:$0xff] }
 0x86f   : > { %2140 = vst.msk [vmem:[#allocation16 + $0x10] sm:$0xff] %vm735_vm6, %v2131_v37  ;;  %v2134_v40 = vld [vmem:[#allocation2 + $0x28] sm:$0xff]  ;;  %2141 = vst.msk [vmem:[#allocation16 + $0x18] sm:$0xff] %vm735_vm6, %v2132_v38  ;;  %v2135_v9 = vld [vmem:[#allocation2 + $0x30] sm:$0xff] }
 0x870   : > { %2142 = vst.msk [vmem:[#allocation16 + $0x20] sm:$0xff] %vm735_vm6, %v2133_v39  ;;  %2143 = vst.msk [vmem:[#allocation16 + $0x28] sm:$0xff] %vm735_vm6, %v2134_v40  ;;  %v2136_v10 = vld [vmem:[#allocation2 + $0x38] sm:$0xff] }
 0x871   : > { %2144 = vst.msk [vmem:[#allocation16 + $0x30] sm:$0xff] %vm735_vm6, %v2135_v9  ;;  %2145 = vst.msk [vmem:[#allocation16 + $0x38] sm:$0xff] %vm735_vm6, %v2136_v10 }
 0x872 PF: > { %s2498_s27 = sshll.u32 %s3152_s30, 7  ;;  %s2162_s21 = sshll.u32 %s580_s25, 4  ;;  %s3853_s21 = int_to_ptr.vmem [resolvable:$true] %s2162_s21 }
 0x873   : > { %s3849_s9 = scalar_lea.hbm %s3931_s7, %s2498_s27  ;;  %s2147_s1 = scalar_lea.sflag [#allocation5], %s3592_s8 }
 0x874   : > { %s3028_s3 = scalar_lea.vmem %s3853_s21, 256  ;;  %p3989_p5 = scmp.ne.s32.totalorder %s3961_s16, 0 }
 0x875   : > { %p3029_p10 = scmp.ne.s32.totalorder %s3853_s21, %s3028_s3  ;;  %s3180_s15 = smov [#allocation15]  }
 0x876   : > { %s3032_s30 = sshll.u32 %s3180_s15, 4  ;;  %s3033_s30 = int_to_ptr.vmem [resolvable:$false] %s3032_s30 }
 0x877   : > { %p3030_p11 = pnand %p3029_p10, %p3989_p5  ;;  %s3034_s19 = scalar_lea.vmem %s3033_s30, 512 }
 0x878   : > { %p3035_p1 = scmp.lt.s32.totalorder %s3853_s21, %s3033_s30  ;;  %p3036_p7 = scmp.lt.s32.totalorder %s3034_s19, %s3028_s3 }
 0x879   : > { %p3031_p13 = pneg %p3030_p11 }
 0x87a   : > { %p3037_p3 = por %p3036_p7, %p3035_p1 }
 0x87c   : > { %p3038_p9 = pnand %p3037_p3, %p3031_p13 }
 0x87e   : > { %3041 = shalt.err (!%p3038_p9)
}
 0x87f   : > { %s3042_s20 = scalar_lea.hbm %s3849_s9, 256  ;;  %s3046_s12 = scalar_lea.hbm %s3931_s7, 512 }
 0x880   : > { %p3043_p4 = scmp.ne.s32.totalorder %s3849_s9, %s3042_s20  ;;  %p3047_p6 = scmp.lt.u32.totalorder %s3849_s9, %s3931_s7 }
 0x881   : > { %p3048_p0 = scmp.lt.u32.totalorder %s3046_s12, %s3042_s20  ;;  %p3050_p10 = scmp.lt.u32.totalorder %s3042_s20, %s3849_s9 }
 0x882   : > { %p3044_p8 = pnand %p3043_p4, %p3989_p5 }
 0x883   : > { %p3049_p2 = por %p3048_p0, %p3047_p6 }
 0x884   : > { %p3045_p12 = pneg %p3044_p8 }
 0x885   : > { %p3051_p11 = por %p3050_p10, %p3049_p2 }
 0x887   : > { %p3052_p13 = pnand %p3051_p11, %p3045_p12 }
 0x889   : > { %3055 = shalt.err (!%p3052_p13)
}
 0x88a   : > { %s3181_s13 = smov 128   ;;  %s3182_s22 = smov 256  }
 0x88b   : > { %s3183_s18 = smov 8   ;;  %s3184_s14 = smov [#allocation16]  }
 0x88c   : > { %2705 = dma.vmem_to_hbm [thread:$0]  (%p3989_p5), %s3853_s21, 256, %s3849_s9, %s2147_s1, %s3181_s13, %s3182_s22, %s3183_s18  }
 0x88d   : > { %s2179_s26 = sshll.u32 %s3184_s14, 4  ;;  %p3990_p7 = scmp.eq.s32.totalorder %s3261_s11, 1  ;;  %s2180_s26 = int_to_ptr.vmem [resolvable:$true] %s2179_s26 }
 0x88e   : > { %s3056_s27 = scalar_lea.vmem %s2180_s26, 1024  ;;  %p3063_p4 = scmp.lt.s32.totalorder %s2180_s26, %s2180_s26 }
 0x88f   : > { %p3057_p1 = scmp.ne.s32.totalorder %s2180_s26, %s3056_s27  ;;  %p3064_p8 = scmp.lt.s32.totalorder %s3056_s27, %s3056_s27 }
 0x891   : > { %p3058_p3 = pnand %p3057_p1, %p3990_p7  ;;  %p3065_p12 = por %p3064_p8, %p3063_p4 }
 0x893   : > { %p3059_p9 = pneg %p3058_p3 }
 0x895   : > { %p3066_p6 = pnand %p3065_p12, %p3059_p9 }
 0x897   : > { %3069 = shalt.err (!%p3066_p6)
}
 0x898   : > { %s3991_s3 = sld [smem:[#allocation34_spill]]  ;;  %p3992_p0 = pmov %p3990_p7 }
 0x89e   : > { %s3070_s16 = scalar_lea.hbm %s3991_s3, 1024 }
 0x89f   : > { %p3071_p5 = scmp.ne.s32.totalorder %s3991_s3, %s3070_s16  ;;  %p3076_p11 = scmp.lt.u32.totalorder %s3070_s16, %s3991_s3 }
 0x8a1   : > { %p3072_p2 = pnand %p3071_p5, %p3992_p0 }
 0x8a3   : > { %p3073_p10 = pneg %p3072_p2 }
 0x8a5   : > { %p3078_p13 = pnand %p3076_p11, %p3073_p10 }
 0x8a7   : > { %3081 = shalt.err (!%p3078_p13)
}
 0x8a8   : > { %p3993_p1 = pmov %p3992_p0  ;;  %p3994_p7 = pmov %p3992_p0 }
 0x8aa   : > { %2707 = dma.vmem_to_hbm [thread:$0]  (%p3993_p1), %s2180_s26, 1024, %s3991_s3, [#allocation17], %s3181_s13, %s3181_s13, %s3183_s18  }
 0x8ab   : > { %3131 = dma.done.wait (%p3994_p7), [#allocation17], 1024   ;;  %p3995_p3 = pmov %p3992_p0 }
 0x8ad   : > { %3133 = vsyncadd (%p3995_p3), [#allocation17], 4294966272 }
 0x8ae PF: > { %s3996_s19 = sld [smem:[#allocation25_spill]]  ;;  %s3997_s20 = sld [smem:[#allocation28_spill]] }
 0x8af   : > { %s3998_s25 = sld [smem:[#allocation27_spill]] }
 0x8b4   : > { %s2198_s24 = sand.u32 1, %s3996_s19   ;;  %p3999_p9 = scmp.ne.s32.totalorder %s3997_s20, 0 }
 0x8b5   : > { %p4000_p4 = scmp.ge.s32.totalorder %s3998_s25, 2  ;;  %s2199_s12 = scalar_lea.sflag [#allocation5], %s2198_s24 }
 0x8b7   : > { %p2735_p8 = pnand %p4000_p4, %p3999_p9 }
 0x8b9   : > { %3135 = dma.done.wait (!%p2735_p8), %s2199_s12, 256  }
 0x8ba   : > { %3137 = vsyncadd (!%p2735_p8), %s2199_s12, 4294967040  ;;  %s35_s10 = sadd.s32 1, %s3998_s25   ;;  %s4001_s23 = sld [smem:[#allocation30_spill]] }
 0x8bb   : > { %p32_p12 = scmp.ge.s32.totalorder %s35_s10, 4   ;;  %s4002_s30 = sld [smem:[#allocation26_spill]] }
 0x8bc   : > { %s4003_s9 = sld [smem:[#allocation29_spill]]  ;;  %s4004_s27 = smov %s3144_s28 }
 0x8bd   : > { %s4005_s28 = smov %s3148_s29  ;;  %34 = sbr.rel (!%p32_p12) target bundleno = 18 (0x12), region = 202 }
 0x8c0   : > { %s4006_s29 = smov %s4001_s23 }
 0x8c4   :  { %2204 = vsyncpa [#allocation4], 1 }
 0x8c5   :  { %2206 = vsyncpa [#allocation4 + $0x1], 1 }
 0x8c6   :  { %2207 = vsyncpa [#allocation7], 1 }
 0x8c7   :  { %2209 = vsyncpa [#allocation7 + $0x1], 1 }
 0x8c8   :  { %2210 = vsyncpa [#allocation10], 1 }
 0x8c9   :  { %2212 = vsyncpa [#allocation10 + $0x1], 1 }
 0x8ca   :  { %2213 = vsyncpa [#allocation13], 1 }
 0x8cb   :  { %2215 = vsyncpa [#allocation13 + $0x1], 1 }
 0x8cc   :  { %2216 = vsyncpa [#allocation5], 1 }
 0x8cd   :  { %2218 = vsyncpa [#allocation5 + $0x1], 1 }
 0x8ce   :  { %2219 = vsyncpa [#allocation17], 1 }

</bundles_post_ra>
